<compile_context>
chip_gen: v5e
topology: v5e:2x2
jax: 0.10.0
libtpu: 0.0.40
codegen_flags: <defaults>
</compile_context>

<pallas_src>
import functools

import jax
import jax.numpy as jnp
import numpy as np
from jax.experimental import pallas as pl
from jax.experimental.pallas import tpu as pltpu


# ----------------------------------------------------------------------------
# Pallas kernel: fused ConvGRUCell(1x1) + BN(eval, folded) + skip-add + 1x1 conv
# Layout: channels on sublanes, pixels on lanes.  Blocks: (ch, tile_pix).
# ----------------------------------------------------------------------------
def _decoder_kernel(h_ref, enc_ref, wg_ref, bg_ref, scale_ref, shift_ref,
                    wo_ref, bo_ref, out_ref, *, seq_len):
    ch = h_ref.shape[0]

    wg = wg_ref[...]                 # (2*ch, ch)  stream dtype (f32 or bf16)
    bg = bg_ref[...]                 # (2*ch, 1)   f32
    scale = scale_ref[...]           # (ch, 1)     f32   gamma * rsqrt(var+eps)
    shift = shift_ref[...]           # (ch, 1)     f32   beta - mean*scale

    h = h_ref[...]                   # (ch, TP)    stream dtype
    for t in range(seq_len):         # static unroll; seq_len == 1 in the model
        # gates = W_eff @ h + b  (input halves pre-added, reset columns dropped)
        gates = jnp.dot(wg, h.astype(wg.dtype),
                        preferred_element_type=jnp.float32) + bg   # (2*ch, TP)
        update = jax.nn.sigmoid(gates[:ch])
        new_state = jnp.tanh(gates[ch:])

        h32 = h.astype(jnp.float32)
        h32 = (1.0 - update) * h32 + update * new_state
        h32 = h32 * scale + shift                 # BatchNorm2d (eval), folded
        if t == 0:
            h32 = h32 + enc_ref[...].astype(jnp.float32)
        # Dropout2d: identity in eval mode
        h = h32

    # Final 1x1 conv: hidden//2 -> output_channels, lane-dense output store.
    out = jnp.dot(wo_ref[...], h.astype(wo_ref.dtype),
                  preferred_element_type=jnp.float32) + bo_ref[...]  # (c_out, TP)
    out_ref[...] = out.astype(out_ref.dtype)


# ----------------------------------------------------------------------------
# Parameter folding (done once, outside the kernel)
# ----------------------------------------------------------------------------
def prepare_kernel_params(params, *, eps=1e-5, stream_dtype=jnp.float32):
    ch = params["bn_gamma"].shape[-1]
    w = params["w_gru"]                       # (2*ch, 3*ch)  (in, out) layout
    b = params["b_gru"]                       # (1, 3*ch)

    # ConvGRUCell is called as cell(h, h): cat([h, h]) @ W == h @ (W[:ch]+W[ch:]).
    w_fold = w[:ch] + w[ch:]                  # (ch, 3*ch)
    # Keep only update-gate and new-state column blocks (reset gate is unused).
    w_keep = jnp.concatenate([w_fold[:, :ch], w_fold[:, 2 * ch:]], axis=1)  # (ch, 2*ch)
    b_keep = jnp.concatenate([b[:, :ch], b[:, 2 * ch:]], axis=1)            # (1, 2*ch)

    # BatchNorm (eval) folded to one scale/shift pair.
    scale = params["bn_gamma"] * jax.lax.rsqrt(params["bn_var"] + eps)      # (1, ch)
    shift = params["bn_beta"] - params["bn_mean"] * scale                   # (1, ch)

    return {
        "wg_t": w_keep.T.astype(stream_dtype),          # (2*ch, ch)
        "bg": b_keep.T.astype(jnp.float32),             # (2*ch, 1)
        "bn_scale": scale.T.astype(jnp.float32),        # (ch, 1)
        "bn_shift": shift.T.astype(jnp.float32),        # (ch, 1)
        "wo_t": params["w_out"].T.astype(stream_dtype), # (c_out, ch)
        "bo": params["b_out"].T.astype(jnp.float32),    # (c_out, 1)
    }


# ----------------------------------------------------------------------------
# Wrapper
# ----------------------------------------------------------------------------
def conv_decoder_forward(encoder_last_state, h, params, *, seq_len=1,
                         tile_pix=4096, eps=1e-5, stream_dtype=jnp.float32):
    """encoder_last_state, h: NCHW float32 arrays of shape (N, ch, H, W).

    tile_pix: pixels per block (lanes). 4096 lanes * ch channels keeps the
    double-buffered working set far below the default scoped VMEM on every
    generation (16 MiB v5e / 32 MiB v6e / 32-of-64 MiB v7x); raise it (and set
    vmem_limit_bytes) only for very large ch.
    """
    n, ch, height, width = h.shape
    hw = height * width
    kp = prepare_kernel_params(params, eps=eps, stream_dtype=stream_dtype)
    c_out = kp["wo_t"].shape[0]

    # NCHW is already channels-before-pixels: plain reshape, no HBM transpose.
    h3 = h.reshape(n, ch, hw).astype(stream_dtype)
    enc3 = encoder_last_state.reshape(n, ch, hw).astype(stream_dtype)

    # Pixel tile: full row if it fits, else a multiple of 128 (tail block is
    # padded/masked automatically by Pallas — no divisibility requirement).
    if hw <= tile_pix:
        tile = hw
    else:
        tile = max(128, (tile_pix // 128) * 128)
    grid = (n, pl.cdiv(hw, tile))

    pix_spec = pl.BlockSpec((pl.Squeezed(), ch, tile), lambda b, i: (b, 0, i))

    def full(shape):
        return pl.BlockSpec(shape, lambda b, i: (0, 0))

    out3 = pl.pallas_call(
        functools.partial(_decoder_kernel, seq_len=seq_len),
        out_shape=jax.ShapeDtypeStruct((n, c_out, hw), jnp.float32),
        grid_spec=pl.GridSpec(
            grid=grid,
            in_specs=[
                pix_spec,                      # h                (ch, tile)
                pix_spec,                      # encoder state    (ch, tile)
                full((2 * ch, ch)),            # folded GRU weight (transposed)
                full((2 * ch, 1)),             # folded GRU bias
                full((ch, 1)),                 # BN scale
                full((ch, 1)),                 # BN shift
                full((c_out, ch)),             # output conv weight (transposed)
                full((c_out, 1)),              # output conv bias
            ],
            out_specs=pl.BlockSpec((pl.Squeezed(), c_out, tile),
                                   lambda b, i: (b, 0, i)),
        ),
        compiler_params=pltpu.CompilerParams(
            dimension_semantics=("parallel", "parallel")),
    )(h3, enc3, kp["wg_t"], kp["bg"], kp["bn_scale"], kp["bn_shift"],
      kp["wo_t"], kp["bo"])

    # (N, C_out, H*W) -> (N, C_out, H, W) -> unsqueeze(1)
    out = out3.reshape(n, c_out, height, width)
    return out[:, None]


# ----------------------------------------------------------------------------
# Pure-JAX reference (eval-mode semantics, full-precision matmuls)
# ----------------------------------------------------------------------------
def conv_decoder_reference(enc, h, params, *, seq_len=1, eps=1e-5):
    n, ch, height, width = h.shape
    prec = jax.lax.Precision.HIGHEST

    def pix(x):
        return jnp.transpose(x, (0, 2, 3, 1)).reshape(-1, x.shape[1])

    hp, ep = pix(h), pix(enc)
    for t in range(seq_len):
        comb = jnp.concatenate([hp, hp], axis=-1)
        gates = jnp.dot(comb, params["w_gru"], precision=prec) + params["b_gru"]
        u = jax.nn.sigmoid(gates[:, :ch])
        nw = jnp.tanh(gates[:, 2 * ch:])
        hp = (1.0 - u) * hp + u * nw
        hp = (hp - params["bn_mean"]) * (
            params["bn_gamma"] / jnp.sqrt(params["bn_var"] + eps)) + params["bn_beta"]
        if t == 0:
            hp = hp + ep
    out = jnp.dot(hp, params["w_out"], precision=prec) + params["b_out"]
    c_out = out.shape[-1]
    out = out.reshape(n, height, width, c_out)
    return jnp.transpose(out, (0, 3, 1, 2))[:, None]


# ----------------------------------------------------------------------------
# Deterministic parameter init (shapes from ConvDecoder.__init__, k=1)
# ----------------------------------------------------------------------------
def make_params(key, hidden_channels, output_channels):
    ch = hidden_channels // 2
    ks = jax.random.split(key, 8)
    k_gru = 1.0 / np.sqrt(2 * ch)
    k_out = 1.0 / np.sqrt(ch)
    return {
        # ConvGRUCell conv: (2*ch -> 3*ch, 1x1) stored as (in, out) matmul weight
        "w_gru": jax.random.uniform(ks[0], (2 * ch, 3 * ch), jnp.float32, -k_gru, k_gru),
        "b_gru": jax.random.uniform(ks[1], (1, 3 * ch), jnp.float32, -k_gru, k_gru),
        # BatchNorm2d(ch) params / running stats (perturbed for a stronger test)
        "bn_gamma": 1.0 + 0.1 * jax.random.normal(ks[2], (1, ch), jnp.float32),
        "bn_beta": 0.1 * jax.random.normal(ks[3], (1, ch), jnp.float32),
        "bn_mean": 0.1 * jax.random.normal(ks[4], (1, ch), jnp.float32),
        "bn_var": 1.0 + jnp.abs(0.1 * jax.random.normal(ks[5], (1, ch), jnp.float32)),
        # Output 1x1 conv: ch -> output_channels
        "w_out": jax.random.uniform(ks[6], (ch, output_channels), jnp.float32, -k_out, k_out),
        "b_out": jax.random.uniform(ks[7], (1, output_channels), jnp.float32, -k_out, k_out),
    }


if __name__ == "__main__":
    # Small shapes: batch=2, hidden_channels=32 -> cell channels=16, spatial 16x16
    batch, hidden_channels, output_channels = 2, 32, 1
    height = width = 16
    ch = hidden_channels // 2
    seq_len = 1  # Seq2SeqAutoencoder calls the decoder with seq_len=1

    key = jax.random.PRNGKey(0)
    kparam, ke, kh = jax.random.split(key, 3)
    params = make_params(kparam, hidden_channels, output_channels)

    encoder_last_state = jax.random.normal(ke, (batch, ch, height, width), jnp.float32)
    h0 = jax.random.normal(kh, (batch, ch, height, width), jnp.float32)

    ref = conv_decoder_reference(encoder_last_state, h0, params, seq_len=seq_len)

    # f32 streaming path (default; safe on v5e).  Tolerance covers possible
    # reduced-precision MXU passes for f32 matmuls.
    out = conv_decoder_forward(encoder_last_state, h0, params, seq_len=seq_len)
    out = jax.block_until_ready(out)
    assert out.shape == (batch, 1, output_channels, height, width), out.shape
    np.testing.assert_allclose(np.asarray(out), np.asarray(ref), rtol=2e-2, atol=2e-2)

    # bf16 streaming path (HBM-bound win on v6e/v7x); looser tolerance.
    out_bf16 = conv_decoder_forward(encoder_last_state, h0, params,
                                    seq_len=seq_len, stream_dtype=jnp.bfloat16)
    out_bf16 = jax.block_until_ready(out_bf16)
    np.testing.assert_allclose(np.asarray(out_bf16), np.asarray(ref), rtol=1e-1, atol=1e-1)

    print("KERNEL_OK")
</pallas_src>

<mosaic_0001>
module attributes {stable_mosaic.version = 11 : i64} {
  func.func @_decoder_kernel(%arg0: i32, %arg1: i32, %arg2: memref<1x16x256xf32, #tpu.memory_space<vmem>>, %arg3: memref<1x16x256xf32, #tpu.memory_space<vmem>>, %arg4: memref<32x16xf32, #tpu.memory_space<vmem>>, %arg5: memref<32x1xf32, #tpu.memory_space<vmem>>, %arg6: memref<16x1xf32, #tpu.memory_space<vmem>>, %arg7: memref<16x1xf32, #tpu.memory_space<vmem>>, %arg8: memref<1x16xf32, #tpu.memory_space<vmem>>, %arg9: memref<1x1xf32, #tpu.memory_space<vmem>>, %arg10: memref<1x1x256xf32, #tpu.memory_space<vmem>>) attributes {dimension_semantics = [#tpu.dimension_semantics<parallel>, #tpu.dimension_semantics<parallel>], iteration_bounds = array<i64: 2, 1>, scalar_prefetch = 0 : i64, scratch_operands = 0 : i64, tpu.core_type = #tpu.core_type<tc>, window_params = [{transform_indices = @transform_0, window_bounds = array<i64: 1, 16, 256>}, {transform_indices = @transform_1, window_bounds = array<i64: 1, 16, 256>}, {pipeline_mode = #tpu.pipeline_mode<synchronous>, transform_indices = @transform_2, window_bounds = array<i64: 32, 16>}, {pipeline_mode = #tpu.pipeline_mode<synchronous>, transform_indices = @transform_3, window_bounds = array<i64: 32, 1>}, {pipeline_mode = #tpu.pipeline_mode<synchronous>, transform_indices = @transform_4, window_bounds = array<i64: 16, 1>}, {pipeline_mode = #tpu.pipeline_mode<synchronous>, transform_indices = @transform_5, window_bounds = array<i64: 16, 1>}, {pipeline_mode = #tpu.pipeline_mode<synchronous>, transform_indices = @transform_6, window_bounds = array<i64: 1, 16>}, {pipeline_mode = #tpu.pipeline_mode<synchronous>, transform_indices = @transform_7, window_bounds = array<i64: 1, 1>}, {transform_indices = @transform_8, window_bounds = array<i64: 1, 1, 256>}]} {
    %c0 = arith.constant 0 : index
    %c0_0 = arith.constant 0 : index
    %0 = vector.load %arg4[%c0, %c0_0] : memref<32x16xf32, #tpu.memory_space<vmem>>, vector<32x16xf32>
    %c0_1 = arith.constant 0 : index
    %c0_2 = arith.constant 0 : index
    %1 = vector.load %arg5[%c0_1, %c0_2] : memref<32x1xf32, #tpu.memory_space<vmem>>, vector<32x1xf32>
    %c0_3 = arith.constant 0 : index
    %c0_4 = arith.constant 0 : index
    %2 = vector.load %arg6[%c0_3, %c0_4] : memref<16x1xf32, #tpu.memory_space<vmem>>, vector<16x1xf32>
    %c0_5 = arith.constant 0 : index
    %c0_6 = arith.constant 0 : index
    %3 = vector.load %arg7[%c0_5, %c0_6] : memref<16x1xf32, #tpu.memory_space<vmem>>, vector<16x1xf32>
    %c0_7 = arith.constant 0 : index
    %c0_8 = arith.constant 0 : index
    %c0_9 = arith.constant 0 : index
    %4 = vector.load %arg2[%c0_7, %c0_8, %c0_9] : memref<1x16x256xf32, #tpu.memory_space<vmem>>, vector<1x16x256xf32>
    %5 = vector.shape_cast %4 : vector<1x16x256xf32> to vector<16x256xf32>
    %cst = arith.constant dense<0.000000e+00> : vector<32x256xf32>
    %6 = tpu.matmul %0, %5, %cst {dimension_numbers = #tpu.dot_dimension_numbers<[1], [0], [0], [1], [0, 0, 1, 1], [], []>} : vector<32x16xf32>, vector<16x256xf32>, vector<32x256xf32> -> vector<32x256xf32>
    %7 = vector.broadcast %1 : vector<32x1xf32> to vector<32x256xf32>
    %8 = arith.addf %6, %7 : vector<32x256xf32>
    %9 = vector.extract_strided_slice %8 {offsets = [0, 0], sizes = [16, 256], strides = [1, 1]} : vector<32x256xf32> to vector<16x256xf32>
    %10 = arith.negf %9 : vector<16x256xf32>
    %11 = math.exp %10 : vector<16x256xf32>
    %cst_10 = arith.constant 1.000000e+00 : f32
    %12 = vector.broadcast %cst_10 : f32 to vector<16x256xf32>
    %13 = arith.addf %12, %11 : vector<16x256xf32>
    %14 = arith.divf %12, %13 : vector<16x256xf32>
    %15 = vector.extract_strided_slice %8 {offsets = [16, 0], sizes = [16, 256], strides = [1, 1]} : vector<32x256xf32> to vector<16x256xf32>
    %16 = math.tanh %15 : vector<16x256xf32>
    %cst_11 = arith.constant 1.000000e+00 : f32
    %17 = vector.broadcast %cst_11 : f32 to vector<16x256xf32>
    %18 = arith.subf %17, %14 : vector<16x256xf32>
    %19 = arith.mulf %18, %5 : vector<16x256xf32>
    %20 = arith.mulf %14, %16 : vector<16x256xf32>
    %21 = arith.addf %19, %20 : vector<16x256xf32>
    %22 = vector.broadcast %2 : vector<16x1xf32> to vector<16x256xf32>
    %23 = arith.mulf %21, %22 : vector<16x256xf32>
    %24 = vector.broadcast %3 : vector<16x1xf32> to vector<16x256xf32>
    %25 = arith.addf %23, %24 : vector<16x256xf32>
    %c0_12 = arith.constant 0 : index
    %c0_13 = arith.constant 0 : index
    %c0_14 = arith.constant 0 : index
    %26 = vector.load %arg3[%c0_12, %c0_13, %c0_14] : memref<1x16x256xf32, #tpu.memory_space<vmem>>, vector<1x16x256xf32>
    %27 = vector.shape_cast %26 : vector<1x16x256xf32> to vector<16x256xf32>
    %28 = arith.addf %25, %27 : vector<16x256xf32>
    %c0_15 = arith.constant 0 : index
    %c0_16 = arith.constant 0 : index
    %29 = vector.load %arg8[%c0_15, %c0_16] : memref<1x16xf32, #tpu.memory_space<vmem>>, vector<1x16xf32>
    %cst_17 = arith.constant dense<0.000000e+00> : vector<1x256xf32>
    %30 = tpu.matmul %29, %28, %cst_17 {dimension_numbers = #tpu.dot_dimension_numbers<[1], [0], [0], [1], [0, 0, 1, 1], [], []>} : vector<1x16xf32>, vector<16x256xf32>, vector<1x256xf32> -> vector<1x256xf32>
    %c0_18 = arith.constant 0 : index
    %c0_19 = arith.constant 0 : index
    %31 = vector.load %arg9[%c0_18, %c0_19] : memref<1x1xf32, #tpu.memory_space<vmem>>, vector<1x1xf32>
    %32 = vector.broadcast %31 : vector<1x1xf32> to vector<1x256xf32>
    %33 = arith.addf %30, %32 : vector<1x256xf32>
    %c0_20 = arith.constant 0 : index
    %c0_21 = arith.constant 0 : index
    %c0_22 = arith.constant 0 : index
    %34 = vector.load %arg10[%c0_20, %c0_21, %c0_22] : memref<1x1x256xf32, #tpu.memory_space<vmem>>, vector<1x1x256xf32>
    %35 = vector.shape_cast %34 : vector<1x1x256xf32> to vector<1x256xf32>
    %36 = vector.shape_cast %33 : vector<1x256xf32> to vector<1x1x256xf32>
    tpu.vector_store %arg10[%c0_20, %c0_21, %c0_22], %36 {strides = array<i32>} : memref<1x1x256xf32, #tpu.memory_space<vmem>>, vector<1x1x256xf32>,
    return
  }
  func.func @transform_0(%arg0: i32, %arg1: i32) -> (i32, i32, i32) {
    %c0_i32 = arith.constant 0 : i32
    %c0_i32_0 = arith.constant 0 : i32
    return %arg0, %c0_i32, %arg1 : i32, i32, i32
  }
  func.func @transform_1(%arg0: i32, %arg1: i32) -> (i32, i32, i32) {
    %c0_i32 = arith.constant 0 : i32
    %c0_i32_0 = arith.constant 0 : i32
    return %arg0, %c0_i32, %arg1 : i32, i32, i32
  }
  func.func @transform_2(%arg0: i32, %arg1: i32) -> (i32, i32) {
    %c0_i32 = arith.constant 0 : i32
    %c0_i32_0 = arith.constant 0 : i32
    %c0_i32_1 = arith.constant 0 : i32
    return %c0_i32, %c0_i32_0 : i32, i32
  }
  func.func @transform_3(%arg0: i32, %arg1: i32) -> (i32, i32) {
    %c0_i32 = arith.constant 0 : i32
    %c0_i32_0 = arith.constant 0 : i32
    %c0_i32_1 = arith.constant 0 : i32
    return %c0_i32, %c0_i32_0 : i32, i32
  }
  func.func @transform_4(%arg0: i32, %arg1: i32) -> (i32, i32) {
    %c0_i32 = arith.constant 0 : i32
    %c0_i32_0 = arith.constant 0 : i32
    %c0_i32_1 = arith.constant 0 : i32
    return %c0_i32, %c0_i32_0 : i32, i32
  }
  func.func @transform_5(%arg0: i32, %arg1: i32) -> (i32, i32) {
    %c0_i32 = arith.constant 0 : i32
    %c0_i32_0 = arith.constant 0 : i32
    %c0_i32_1 = arith.constant 0 : i32
    return %c0_i32, %c0_i32_0 : i32, i32
  }
  func.func @transform_6(%arg0: i32, %arg1: i32) -> (i32, i32) {
    %c0_i32 = arith.constant 0 : i32
    %c0_i32_0 = arith.constant 0 : i32
    %c0_i32_1 = arith.constant 0 : i32
    return %c0_i32, %c0_i32_0 : i32, i32
  }
  func.func @transform_7(%arg0: i32, %arg1: i32) -> (i32, i32) {
    %c0_i32 = arith.constant 0 : i32
    %c0_i32_0 = arith.constant 0 : i32
    %c0_i32_1 = arith.constant 0 : i32
    return %c0_i32, %c0_i32_0 : i32, i32
  }
  func.func @transform_8(%arg0: i32, %arg1: i32) -> (i32, i32, i32) {
    %c0_i32 = arith.constant 0 : i32
    %c0_i32_0 = arith.constant 0 : i32
    return %arg0, %c0_i32, %arg1 : i32, i32, i32
  }
}

</mosaic_0001>

<bundles_post_ra>
// kernel: tpu_custom_call.1
= control target key start
LH: loop header
LB: loop body
LE: loop exit
PB: predicated region body
PF: predicated region fallthrough
CT: control target
= control target key end

     0   :  { %s1318_s0 = inlined_call_operand.vmem [shape: f32[2,16,256], index: 0, kind: input, shape index: {}]   ;;  %s1319_s1 = inlined_call_operand.hbm [shape: f32[2,16,256], index: 1, kind: input, shape index: {}]   ;;  %s1320_s2 = inlined_call_operand.vmem [shape: f32[32,16], index: 2, kind: input, shape index: {}]   ;;  %s1321_s3 = inlined_call_operand.vmem [shape: f32[32,1], index: 3, kind: input, shape index: {}]   ;;  %s1322_s4 = inlined_call_operand.vmem [shape: f32[16,1], index: 4, kind: input, shape index: {}]   ;;  %s1323_s5 = inlined_call_operand.vmem [shape: f32[16,1], index: 5, kind: input, shape index: {}]   ;;  %s1324_s6 = inlined_call_operand.vmem [shape: f32[1,16], index: 6, kind: input, shape index: {}]   ;;  %s1325_s7 = inlined_call_operand.<no memory space> [shape: f32[1,1], index: 7, kind: input, shape index: {}]   ;;  %s1326_s8 = inlined_call_operand.hbm [shape: f32[2,1,256], index: 8, kind: output, shape index: {}]  }
   0x1   :  { %v13_v0 = vstv %s1325_s7 }
   0x2   :  { %14 = vst [vmem:[#allocation2] sm:$0x1] %v13_v0 }
   0x3   :  { %15 = vsyncpa [#allocation4], 0 }
   0x4   :  { %17 = vsyncpa [#allocation4 + $0x1], 0 }
   0x5   :  { %18 = vsyncpa [#allocation5], 0 }
   0x6   :  { %20 = vsyncpa [#allocation5 + $0x1], 0  ;;  %s1097_s29 = smov 0   ;;  %s1099_s30 = smov 0  }
   0x7   :  { %s1101_s9 = smov 0   ;;  %s1103_s10 = smov 0  }
   0x8   :  { %s1105_s11 = smov 0   ;;  %s1107_s12 = smov 0  }
   0x9 LB: > { %1329 = sst [smem:[#allocation9_spill]] %s1040_s11  ;;  %s804_s7 = sadd.s32 4294967295, %s1044_s12   ;;  %s1044_s12 = sphi %s1107_s12, %s26_s12   ;;  %s1040_s11 = sphi %s1105_s11, %s1338_s11   ;;  %s1036_s10 = sphi %s1103_s10, %s1337_s10   ;;  %s1032_s9 = sphi %s1101_s9, %s1341_s9   ;;  %s1028_s30 = sphi %s1099_s30, %s1340_s30   ;;  %s1024_s29 = sphi %s1097_s29, %s1339_s29  }
   0xa   : > { %s805_s13 = sadd.s32 4294967294, %s1044_s12   ;;  %s38_s14 = sadd.s32 1, %s1040_s11 }
   0xb   : > { %s75_s15 = sadd.s32 1, %s1032_s9  ;;  %p40_p0 = scmp.ge.s32.totalorder %s38_s14, 2 }
   0xc   : > { %p82_p1 = scmp.ne.s32.totalorder %s1032_s9, %s1028_s30  ;;  %p83_p2 = scmp.eq.s32.totalorder %s1044_s12, 0 }
   0xd   : > { %p88_p3 = scmp.ne.s32.totalorder %s1028_s30, %s1024_s29  ;;  %s1343_s14 = smov (%p40_p0, %s38_s14), 0 }
   0xe   : > { %1330 = sst [smem:[#allocation10_spill]] %s1343_s14  ;;  %p1138_p4 = por %p83_p2, %p82_p1 }
   0xf   : > { %p89_p5 = scmp.eq.s32.totalorder %s804_s7, 0  ;;  %s70_s17 = ssub.s32 %s1040_s11, %s1343_s14 }
  0x10   : > { %p240_p6 = scmp.eq.s32.totalorder %s804_s7, 1  ;;  %p73_p7 = scmp.eq.s32.totalorder %s70_s17, 0 }
  0x11   : > { %p1144_p8 = por %p89_p5, %p88_p3  ;;  %p246_p10 = scmp.eq.s32.totalorder %s805_s13, 1 }
  0x12   : > { %p1148_p9 = por %p240_p6, %p82_p1  ;;  %p807_p12 = scmp.ge.s32.totalorder %s1044_s12, 2 }
  0x13   : > { %s1153_s20 = scalar_select %p73_p7, %s1032_s9, %s75_s15  }
  0x14   : > { %p1155_p11 = por %p246_p10, %p88_p3  ;;  %p852_p13 = scmp.lt.s32.totalorder %s1044_s12, 2 }
  0x15   : > { %s297_s22 = sand.u32 1, %s1032_s9   ;;  %s834_s24 = sshll.u32 %s1040_s11, 5 }
  0x16   : > { %s808_s23 = sshll.u32 %s297_s22, 5  ;;  %s308_s27 = scalar_lea.hbm %s1319_s1, %s834_s24 }
  0x17   : > { %s301_s28 = scalar_lea.vmem [#allocation3], %s808_s23  ;;  %s309_s17 = sshll.u32 %s308_s27, 4  ;;  %s310_s17 = int_to_ptr.hbm [resolvable:$true] %s309_s17 }
  0x18   : > { %s311_s7 = sshll.u32 %s301_s28, 4  ;;  %p845_p0 = pnand %p852_p13, %p1138_p4  ;;  %s312_s7 = int_to_ptr.vmem [resolvable:$true] %s311_s7 }
  0x19   : > { %p811_p1 = scmp.ge.s32.totalorder %s1044_s12, 1  ;;  %s298_s13 = scalar_lea.sflag [#allocation4], %s297_s22 }
  0x1a   : > { %s1046_s15 = smov 256   ;;  %s1047_s14 = smov 16  }
  0x1b   : > { %847 = dma.hbm_to_vmem [thread:$0]  (!%p845_p0), %s310_s17, 512, %s312_s7, %s298_s13, %s1046_s15, %s1046_s15, %s1047_s14  }
  0x1c   : > { %p319_p2 = scmp.lt.s32.totalorder %s1044_s12, 3 }
  0x1e   : > { %p320_p3 = pnand %p811_p1, %p319_p2 }
  0x1f   : > { %s1171_s11 = sand.u32 (!%p320_p3), 1, %s1028_s30  }
  0x20   : > { %323 = sbr.rel (%p320_p3) target bundleno = 370 (0x172), region = 52  ;;  %s812_s23 = sshll.u32 (!%p320_p3), %s1171_s11, 5 }
  0x21   : > { %s326_s24 = scalar_lea.sflag (!%p320_p3), [#allocation4], %s1171_s11  ;;  %s1175_s25 = scalar_lea.vmem (!%p320_p3), [#allocation3], %s812_s23 }
  0x25   : > { %1015 = dma.done.wait (%p1144_p8), %s326_s24, 512  }
  0x26   : > { %1017 = vsyncadd (%p1144_p8), %s326_s24, 4294966784  ;;  %p373_p4 = scmp.lt.s32.totalorder %s1036_s10, 1  ;;  %v1048_v1 = vmov 0   ;;  %v389_v6 = vld [vmem:[%s1321_s3 + $0x8] sm:$0xff]  ;;  %v384_v7 = vld [vmem:[%s1320_s2] sm:$0xff]  ;;  %vm420_vm0 = vcmask 130048  }
  0x27   : > { %905 = vset.pattern.permute.xlu0 %v1048_v1  ;;  %906 = vset.pattern.permute.xlu1 %v1048_v1  ;;  %v387_v8 = vld [vmem:[%s1320_s2 + $0x18] sm:$0xff]  ;;  %v393_v10 = vld [vmem:[%s1322_s4 + $0x8] sm:$0xff]  ;;  %v388_v11 = vld [vmem:[%s1321_s3] sm:$0xff]  ;;  %s813_s18 = sshll.u32 %s1171_s11, 1  ;;  %s831_s28 = sshll.u32 %s1036_s10, 1 }
  0x28   : > { %s374_s14 = scalar_select %p373_p4, %s1036_s10, 1  ;;  %907 = vset.pattern.permute.xlu2 %v1048_v1  ;;  %407 = vperm.xlu0 %905, %v389_v6   ;;  %v391_v9 = vld [vmem:[%s1321_s3 + $0x18] sm:$0xff]  ;;  %v385_v12 = vld [vmem:[%s1320_s2 + $0x8] sm:$0xff]  ;;  %v390_v13 = vld [vmem:[%s1321_s3 + $0x10] sm:$0xff] }
  0x29   : > { %417 = vperm.xlu1 %906, %v391_v9   ;;  %594 = vperm.xlu2 %907, %v393_v10   ;;  %v392_v14 = vld [vmem:[%s1322_s4] sm:$0xff]  ;;  %v395_v15 = vld [vmem:[%s1323_s5 + $0x8] sm:$0xff]  ;;  %v386_v16 = vld [vmem:[%s1320_s2 + $0x10] sm:$0xff]  ;;  %s371_s13 = scalar_lea.vmem [#allocation6], %s813_s18  ;;  %s686_s10 = scalar_lea.sflag [#allocation5], %s1171_s11 }
  0x2a   : > { %s835_s16 = sshll.u32 %s374_s14, 5  ;;  %v394_v17 = vld [vmem:[%s1323_s5] sm:$0xff]  ;;  %s700_s15 = sshll.u32 %s371_s13, 4  ;;  %s701_s15 = int_to_ptr.vmem [resolvable:$true] %s700_s15 }
  0x2b   : > { %s380_s27 = scalar_lea.vmem %s1318_s0, %s835_s16  ;;  %v624_v18 = vld [vmem:[#allocation2] sm:$0x1]  ;;  %s982_s26 = scalar_lea.hbm %s1326_s8, 4 }
  0x2c   : > { %v1186_v2 = vld [vmem:[%s380_s27 + $0x10] sm:$0xff]  ;;  %v1188_v3 = vld [vmem:[%s380_s27 + $0x18] sm:$0xff]  ;;  %v1190_v4 = vld [vmem:[%s380_s27] sm:$0xff] }
  0x2d   : > { %447 = vmatpush.msra.mxu0 %v1186_v2  ;;  %476 = vmatpush.msra.mxu1 %v1188_v3  ;;  %v1194_v5 = vld [vmem:[%s380_s27 + $0x8] sm:$0xff]  ;;  %v618_v62 = vld [vmem:[%s1175_s25 + $0x18] sm:$0xff] }
  0x2e   : > { %836 = vmatpush.msra.mxu2 %v1186_v2  ;;  %838 = vmatpush.msra.mxu3 %v1188_v3 }
  0x2f   : > { %448 = vmatpush.msra.mxu0 %v1190_v4  ;;  %477 = vmatpush.msra.mxu1 %v1194_v5 }
  0x30   : > { %816 = vmatmul.msk.f32.vlgmr.msra.gmra.mxu0 %vm420_vm0, %v384_v7  ;;  %820 = vmatmul.msk.f32.vlgmr.msra.gmra.mxu1 %vm420_vm0, %v384_v7 }
  0x31   : > { %837 = vmatpush.msra.mxu2 %v1190_v4  ;;  %839 = vmatpush.msra.mxu3 %v1194_v5 }
  0x32   : > { %819 = vmatmul.msk.f32.vlgmr.msra.gmra.mxu2 %vm420_vm0, %v387_v8  ;;  %823 = vmatmul.msk.f32.vlgmr.msra.gmra.mxu3 %vm420_vm0, %v387_v8 }
  0x33   : > { %402 = vperm.xlu0 %905, %v388_v11   ;;  %412 = vperm.xlu1 %906, %v390_v13  }
  0x34   : > { %589 = vperm.xlu2 %907, %v392_v14  }
  0x38   : > { %817 = vmatmul.msk.f32.gmra.mxu0 %vm420_vm0, %v385_v12  ;;  %821 = vmatmul.msk.f32.gmra.mxu1 %vm420_vm0, %v385_v12 }
  0x3b   : > { %608 = vperm.xlu0 %905, %v395_v15   ;;  %603 = vperm.xlu1 %906, %v394_v17  }
  0x3c   : > { %627 = vperm.xlu2 %907, %v624_v18  }
  0x40   : > { %818 = vmatmul.msk.f32.gmra.mxu0 %vm420_vm0, %v386_v16  ;;  %822 = vmatmul.msk.f32.gmra.mxu1 %vm420_vm0, %v386_v16 }
  0x83   : > { %v595_v16 = vpop.permute.xlu2 %594 }
  0x9a   : > { %v408_v19 = vpop.permute.xlu0 %407 }
  0x9b   : > { %v418_v37 = vpop.permute.xlu1 %417 }
  0xa5   : > { %v403_v20 = vpop.permute.xlu0 %402  ;;  %v413_v48 = vpop.permute.xlu1 %412 }
  0xad   : > { %v450_v21 = vpop.f32.mrf.mxu0  ;;  %v479_v22 = vpop.f32.mrf.mxu1 }
  0xae   : > { %v451_v23 = vadd.f32 %v450_v21, %v403_v20  ;;  %v480_v24 = vadd.f32 %v479_v22, %v403_v20 }
  0xb0   : > { %v824_v25 = vmul.f32 -1.442695, %v451_v23  ;;  %v825_v26 = vmul.f32 -1.442695, %v480_v24 }
  0xb2   : > { %908 = vpow2.f32 %v824_v25 }
  0xb3   : > { %910 = vpow2.f32 %v825_v26 }
  0xb5   : > { %v453_v27 = vpop.f32.mrf.mxu0  ;;  %v482_v28 = vpop.f32.mrf.mxu1 }
  0xb6   : > { %v454_v29 = vadd.f32 %v453_v27, %v408_v19  ;;  %v483_v30 = vadd.f32 %v482_v28, %v408_v19  ;;  %v459_v55 = vpop.f32.mrf.mxu2  ;;  %v488_v8 = vpop.f32.mrf.mxu3 }
  0xb7   : > { %v460_v1 = vadd.f32 %v459_v55, %v418_v37  ;;  %v489_v21 = vadd.f32 %v488_v8, %v418_v37 }
  0xb8   : > { %v909_v31 = vpop.eup %908  ;;  %v826_v32 = vmul.f32 -1.442695, %v454_v29  ;;  %v827_v35 = vmul.f32 -1.442695, %v483_v30 }
  0xb9   : > { %v911_v33 = vpop.eup %910  ;;  %v503_v34 = vadd.f32 1.0, %v909_v31 }
  0xba   : > { %v504_v36 = vadd.f32 1.0, %v911_v33  ;;  %912 = vpow2.f32 %v826_v32 }
  0xbb   : > { %914 = vrcp.f32 %v503_v34  ;;  %v516_v52 = vand.u32 2147483647, %v503_v34  ;;  %v518_v53 = vand.u32 2147483648, %v503_v34  ;;  %vm512_vm3 = vweird.f32 %v503_v34 }
  0xbc   : > { %916 = vrcp.f32 %v504_v36  ;;  %v533_v54 = vand.u32 2147483648, %v504_v36  ;;  %v531_v58 = vand.u32 2147483647, %v504_v36  ;;  %vm527_vm5 = vweird.f32 %v504_v36 }
  0xbd   : > { %918 = vpow2.f32 %v827_v35  ;;  %v456_v43 = vpop.f32.mrf.mxu0  ;;  %v485_v51 = vpop.f32.mrf.mxu1  ;;  %v519_v6 = vor.u32 1.1754944e-38, %v518_v53  ;;  %vm517_vm7 = vcmp.eq.f32.partialorder %v516_v52, 8.507059e+37 }
  0xbe   : > { %v457_v50 = vadd.f32 %v456_v43, %v413_v48  ;;  %v486_v59 = vadd.f32 %v485_v51, %v413_v48  ;;  %v534_v7 = vor.u32 1.1754944e-38, %v533_v54  ;;  %vm532_vm8 = vcmp.eq.f32.partialorder %v531_v58, 8.507059e+37  ;;  %v609_v53 = vpop.permute.xlu0 %608  ;;  %v604_v54 = vpop.permute.xlu1 %603 }
  0xc0   : > { %v913_v38 = vpop.eup %912 }
  0xc1   : > { %v915_v39 = vpop.eup %914  ;;  %v1246_v40 = vadd.f32 1.0, %v913_v38 }
  0xc2   : > { %v917_v41 = vpop.eup %916  ;;  %v508_v42 = vmul.f32 %v915_v39, %v503_v34  ;;  %vm513_vm1 = vweird.f32 %v915_v39 }
  0xc3   : > { %v919_v44 = vpop.eup %918  ;;  %v523_v45 = vmul.f32 %v917_v41, %v504_v36  ;;  %920 = vrcp.f32 %v1246_v40  ;;  %vm528_vm2 = vweird.f32 %v917_v41  ;;  %vm1252_vm4 = vmor %vm512_vm3, %vm513_vm1  ;;  %v548_v17 = vand.u32 2147483648, %v1246_v40 }
  0xc4   : > { %v509_v46 = vsub.f32 1.0, %v508_v42  ;;  %v1249_v47 = vadd.f32 1.0, %v919_v44  ;;  %vm529_vm6 = vmor %vm527_vm5, %vm528_vm2  ;;  %v546_v20 = vand.u32 2147483647, %v1246_v40  ;;  %vm542_vm10 = vweird.f32 %v1246_v40 }
  0xc5   : > { %v524_v49 = vsub.f32 1.0, %v523_v45  ;;  %v549_v28 = vor.u32 1.1754944e-38, %v548_v17  ;;  %vm677_vm2 = vcmask 1040384  }
  0xc6   : > { %922 = vrcp.f32 %v1249_v47  ;;  %v510_v56 = vmul.f32 %v915_v39, %v509_v46  ;;  %v563_v26 = vand.u32 2147483648, %v1249_v47  ;;  %v561_v30 = vand.u32 2147483647, %v1249_v47  ;;  %v590_v46 = vpop.permute.xlu2 %589 }
  0xc7   : > { %v525_v57 = vmul.f32 %v917_v41, %v524_v49  ;;  %924 = vtanh.f32 %v457_v50  ;;  %vm547_vm13 = vcmp.eq.f32.partialorder %v546_v20, 8.507059e+37  ;;  %vm557_vm14 = vweird.f32 %v1249_v47 }
  0xc8   : > { %v511_v61 = vadd.f32 %v915_v39, %v510_v56  ;;  %926 = vtanh.f32 %v486_v59  ;;  %vm562_vm1 = vcmp.eq.f32.partialorder %v561_v30, 8.507059e+37  ;;  %v617_v56 = vld [vmem:[%s1175_s25 + $0x10] sm:$0xff] }
  0xc9   : > { %v921_v60 = vpop.eup %920  ;;  %v526_v63 = vadd.f32 %v917_v41, %v525_v57  ;;  %928 = vtanh.f32 %v460_v1 }
  0xca   : > { %v538_v0 = vmul.f32 %v921_v60, %v1246_v40  ;;  %v515_v9 = vsel %vm1252_vm4, %v915_v39, %v511_v61  ;;  %vm543_vm9 = vweird.f32 %v921_v60  ;;  %930 = vtanh.f32 %v489_v21 }
  0xcb   : > { %v530_v10 = vsel %vm529_vm6, %v917_v41, %v526_v63  ;;  %v520_v13 = vsel %vm517_vm7, %v519_v6, %v515_v9  ;;  %vm544_vm11 = vmor %vm542_vm10, %vm543_vm9  ;;  %v623_v6 = vld [vmem:[%s1324_s6] sm:$0x1] }
  0xcc   : > { %v923_v11 = vpop.eup %922  ;;  %v539_v12 = vsub.f32 1.0, %v538_v0  ;;  %v535_v14 = vsel %vm532_vm8, %v534_v7, %v530_v10  ;;  %v571_v18 = vsub.f32 1.0, %v520_v13 }
  0xcd   : > { %v553_v15 = vmul.f32 %v923_v11, %v1249_v47  ;;  %v925_v22 = vpop.eup %924  ;;  %v572_v24 = vsub.f32 1.0, %v535_v14  ;;  %vm558_vm12 = vweird.f32 %v923_v11 }
  0xce   : > { %v540_v19 = vmul.f32 %v921_v60, %v539_v12  ;;  %v575_v27 = vmul.f32 %v571_v18, %v1190_v4  ;;  %v927_v31 = vpop.eup %926  ;;  %v579_v33 = vmul.f32 %v925_v22, %v520_v13  ;;  %vm559_vm15 = vmor %vm557_vm14, %vm558_vm12  ;;  %v564_v4 = vor.u32 1.1754944e-38, %v563_v26  ;;  %v628_v9 = vpop.permute.xlu2 %627 }
  0xcf   : > { %v554_v23 = vsub.f32 1.0, %v553_v15  ;;  %v576_v36 = vmul.f32 %v572_v24, %v1194_v5  ;;  %v929_v39 = vpop.eup %928  ;;  %v580_v41 = vmul.f32 %v927_v31, %v535_v14  ;;  %v630_v10 = vperm.slane %v628_v9, 0 }
  0xd0   : > { %v541_v25 = vadd.f32 %v921_v60, %v540_v19  ;;  %v583_v38 = vadd.f32 %v579_v33, %v575_v27  ;;  %v931_v47 = vpop.eup %930 }
  0xd1   : > { %v555_v29 = vmul.f32 %v923_v11, %v554_v23  ;;  %v584_v48 = vadd.f32 %v580_v41, %v576_v36 }
  0xd2   : > { %v545_v32 = vsel %vm544_vm11, %v921_v60, %v541_v25  ;;  %v597_v5 = vmul.f32 %v590_v46, %v583_v38  ;;  %v615_v60 = vld [vmem:[%s1175_s25] sm:$0xff] }
  0xd3   : > { %v550_v34 = vsel %vm547_vm13, %v549_v28, %v545_v32  ;;  %v556_v35 = vadd.f32 %v923_v11, %v555_v29  ;;  %v598_v55 = vmul.f32 %v590_v46, %v584_v48 }
  0xd4   : > { %v573_v37 = vsub.f32 1.0, %v550_v34  ;;  %v581_v42 = vmul.f32 %v929_v39, %v550_v34 }
  0xd5   : > { %v560_v40 = vsel %vm559_vm15, %v923_v11, %v556_v35  ;;  %v612_v0 = vadd.f32 %v604_v54, %v598_v55  ;;  %v680_v11 = vlaneseq }
  0xd6   : > { %v565_v43 = vsel %vm562_vm1, %v564_v4, %v560_v40  ;;  %v577_v44 = vmul.f32 %v573_v37, %v1186_v2  ;;  %v611_v2 = vadd.f32 %v604_v54, %v597_v5 }
  0xd7   : > { %v574_v45 = vsub.f32 1.0, %v565_v43  ;;  %v582_v50 = vmul.f32 %v931_v47, %v565_v43 }
  0xd8   : > { %v585_v49 = vadd.f32 %v581_v42, %v577_v44  ;;  %v619_v1 = vadd.f32 %v615_v60, %v611_v2 }
  0xd9   : > { %v578_v51 = vmul.f32 %v574_v45, %v1188_v3  ;;  %v616_v3 = vld [vmem:[%s1175_s25 + $0x8] sm:$0xff]  ;;  %s698_s25 = scalar_lea.hbm %s1326_s8, %s831_s28 }
  0xda   : > { %v599_v52 = vmul.f32 %v595_v16, %v585_v49  ;;  %v620_v8 = vadd.f32 %v616_v3, %v612_v0  ;;  %s702_s23 = sshll.u32 %s698_s25, 4  ;;  %s703_s23 = int_to_ptr.hbm [resolvable:$true] %s702_s23 }
  0xdb   : > { %v586_v57 = vadd.f32 %v582_v50, %v578_v51  ;;  %s976_s24 = sshra.s32 %s703_s23, 4  ;;  %s977_s24 = int_to_ptr.hbm [resolvable:$true] %s976_s24 }
  0xdc   : > { %v613_v58 = vadd.f32 %v609_v53, %v599_v52  ;;  %s978_s14 = scalar_lea.hbm %s977_s24, 2  ;;  %p983_p8 = scmp.lt.s32.totalorder %s977_s24, %s1326_s8 }
  0xdd   : > { %v600_v59 = vmul.f32 %v595_v16, %v586_v57  ;;  %p979_p5 = scmp.ne.s32.totalorder %s977_s24, %s978_s14  ;;  %p984_p10 = scmp.lt.s32.totalorder %s982_s26, %s978_s14 }
  0xde   : > { %v621_v61 = vadd.f32 %v617_v56, %v613_v58 }
  0xdf   : > { %v614_v63 = vadd.f32 %v609_v53, %v600_v59  ;;  %p980_p6 = pnand %p979_p5, %p1148_p9  ;;  %p985_p13 = por %p984_p10, %p983_p8 }
  0xe0   : > { %648 = vmatpush.msrb.mxu2 %v621_v61 }
  0xe1   : > { %v622_v7 = vadd.f32 %v618_v62, %v614_v63  ;;  %p981_p7 = pneg %p980_p6 }
  0xe2   : > { %649 = vmatpush.msrb.mxu2 %v619_v1 }
  0xe3   : > { %668 = vmatpush.msrb.mxu3 %v622_v7  ;;  %828 = vmatmul.msk.f32.vlgmr.msrb.gmra.mxu2 %vm420_vm0, %v623_v6  ;;  %p986_p0 = pnand %p985_p13, %p981_p7 }
  0xe5   : > { %669 = vmatpush.msrb.mxu3 %v620_v8 }
  0xe6   : > { %829 = vmatmul.msk.f32.vlgmr.msrb.gmra.mxu3 %vm420_vm0, %v623_v6  ;;  %vm682_vm0 = vcmp.lt.s32.totalorder %v680_v11, 256 }
 0x166   : > { %v651_v12 = vpop.f32.mrf.mxu2 }
 0x167   : > { %v652_v15 = vadd.f32 %v651_v12, %v630_v10 }
 0x169   : > { %v671_v13 = vpop.f32.mrf.mxu3 }
 0x16a   : > { %v672_v14 = vadd.f32 %v671_v13, %v630_v10 }
 0x16c   : > { %v676_v16 = vrot.slane %v672_v14, 7 }
 0x16e   : > { %v678_v17 = vsel %vm677_vm2, %v652_v15, %v676_v16 }
 0x16f   : > { %684 = vst.msk [vmem:[%s371_s13] sm:$0x3] %vm682_vm0, %v678_v17 }
 0x170   : > { %989 = shalt.err (!%p986_p0)
}
 0x171   : > { %842 = dma.vmem_to_hbm [thread:$0]  (%p1148_p9), %s701_s15, 32, %s703_s23, %s686_s10  }
 0x172 PF: > { %s714_s11 = sand.u32 1, %s1024_s29   ;;  %p849_p1 = pnand %p807_p12, %p1155_p11 }
 0x173   : > { %s715_s28 = scalar_lea.sflag [#allocation5], %s714_s11 }
 0x174   : > { %p850_p2 = pneg %p849_p1 }
 0x176   : > { %1019 = dma.done.wait (%p850_p2), %s715_s28, 32  }
 0x177   : > { %1021 = vsyncadd (%p850_p2), %s715_s28, 4294967264  ;;  %s26_s12 = sadd.s32 1, %s1044_s12   ;;  %s1337_s10 = sld [smem:[#allocation9_spill]] }
 0x178   : > { %p23_p3 = scmp.ge.s32.totalorder %s26_s12, 4   ;;  %s1338_s11 = sld [smem:[#allocation10_spill]] }
 0x179   : > { %s1339_s29 = smov %s1028_s30  ;;  %s1340_s30 = smov %s1032_s9 }
 0x17a   : > { %s1341_s9 = smov %s1153_s20  ;;  %25 = sbr.rel (!%p23_p3) target bundleno = 9 (0x9), region = 100 }
 0x17f   :  { %721 = vsyncpa [#allocation4], 1 }
 0x180   :  { %723 = vsyncpa [#allocation4 + $0x1], 1 }
 0x181   :  { %724 = vsyncpa [#allocation5], 1 }
 0x182   :  { %726 = vsyncpa [#allocation5 + $0x1], 1 }

</bundles_post_ra>
